<compile_context>
chip_gen: v5e
topology: v5e:2x2
jax: 0.10.0
libtpu: 0.0.40
codegen_flags: <defaults>
</compile_context>

<pallas_src>
import jax
import jax.numpy as jnp
from jax import lax
from jax.experimental import pallas as pl
from jax.experimental.pallas import tpu as pltpu

_LANE = 128


def _round_up(x, m):
    return ((x + m - 1) // m) * m


def _sublane(dtype):
    return {4: 8, 2: 16, 1: 32}.get(jnp.dtype(dtype).itemsize, 8)


def _make_conv2d_kernel(kh, kw, tile_oh, owp, halo, strip):
    """Per-grid-step kernel: one lane-dense (tile_oh, owp) output block."""
    n_strips = tile_oh // strip

    def kernel(w_ref, b_ref, x_ref, xh_ref, o_ref, ts_ref):
        # w_ref : SMEM (kh*kw,) flattened weights ; b_ref : SMEM (1,) bias
        # x_ref : VMEM (tile_oh, wp)  main input rows of this tile
        # xh_ref: VMEM (halo,    wp)  first rows of the next tile (row halo)
        # o_ref : VMEM (tile_oh, owp) output block (lane-dense, unmasked vst)
        # ts_ref: VMEM (strip+halo, wp) tiny f32 slab stitching the row halo
        w = [w_ref[k] for k in range(kh * kw)]          # hoisted scalar reads
        bias = b_ref[0]

        def strip_acc(read):
            # Per-strip accumulator (strip x owp f32, <= ~16 vregs); dies at the
            # store below, so there is no full-tile vreg live range / spilling.
            acc = jnp.zeros((strip, owp), jnp.float32)
            for i in range(kh):
                for j in range(kw):
                    acc = acc + w[i * kw + j] * read(i, j)
            return (acc + bias).astype(o_ref.dtype)

        def interior(s, carry):
            # Interior strips never need the halo rows (strip >= kh-1), so they
            # read x_ref directly with small static sublane/lane offsets.
            r0 = pl.multiple_of(s * strip, strip)
            o_ref[pl.ds(r0, strip), :] = strip_acc(
                lambda i, j: x_ref[pl.ds(r0 + i, strip), j:j + owp]
                .astype(jnp.float32))
            return carry

        lax.fori_loop(0, n_strips - 1, interior, 0)

        # Last strip of the tile: stitch the (kh-1)-row halo on via one small
        # contiguous f32 slab (written once -> no per-column WAR serialization).
        ts_ref[0:strip, :] = x_ref[tile_oh - strip:tile_oh, :].astype(jnp.float32)
        ts_ref[strip:strip + halo, :] = xh_ref[...].astype(jnp.float32)
        o_ref[tile_oh - strip:tile_oh, :] = strip_acc(
            lambda i, j: ts_ref[i:i + strip, j:j + owp])

    return kernel


def conv2d_pallas(x, weight, bias, *, tile_oh=None):
    """2D cross-correlation (valid padding) of a 2D array plus a scalar bias."""
    H, W = x.shape
    kh, kw = weight.shape
    oh, ow = H - kh + 1, W - kw + 1
    assert oh >= 1 and ow >= 1, "kernel larger than input"

    itemsize = jnp.dtype(x.dtype).itemsize
    sub = _sublane(x.dtype)                       # dtype-aware sublane multiple

    # ---- geometry --------------------------------------------------------
    owp = _round_up(ow, _LANE)                    # lane-dense output block width
    wp = _round_up(owp + kw - 1, _LANE)           # input block width (column shifts)
    halo = _round_up(max(kh - 1, 1), sub)         # row-halo block height

    # Row-strip height: keep each strip's f32 accumulator around <= 16 vregs.
    strip = max(sub, ((16 * 8 * _LANE) // owp) // sub * sub)
    strip = min(strip, 64)
    strip = _round_up(max(strip, halo), halo)

    # ---- generation-aware VMEM budget --------------------------------------
    try:
        vmem_cap = getattr(pltpu.get_tpu_info(), "vmem_capacity_bytes",
                           64 * 1024 * 1024)
    except Exception:                              # conservative fallback
        vmem_cap = 64 * 1024 * 1024
    if vmem_cap >= 100 * 1024 * 1024:              # v5e / v6e (128 MiB physical)
        budget, vmem_limit = 48 * 1024 * 1024, 96 * 1024 * 1024
    else:                                          # v7x (64 MiB per TensorCore)
        budget, vmem_limit = 20 * 1024 * 1024, 32 * 1024 * 1024

    per_row = 2 * wp * itemsize + 2 * owp * itemsize   # double-buffered in/out
    fixed = 2 * halo * wp * itemsize + (strip + halo) * wp * 4
    user_tile = tile_oh is not None
    if not user_tile:
        tile_oh = max(strip, ((budget - fixed) // per_row) // strip * strip)
    else:
        tile_oh = _round_up(max(tile_oh, halo), halo)
        if strip >= tile_oh:
            strip = tile_oh                        # still a multiple of halo
        else:
            tile_oh = _round_up(tile_oh, strip)
    tile_oh = max(strip, min(tile_oh, _round_up(oh, strip)))

    nt = pl.cdiv(oh, tile_oh)
    if not user_tile and nt > 1 and nt % 2 == 1:
        # v7x megacore ("parallel" split of the row-tile axis): prefer an even
        # tile count so neither TensorCore idles on a trailing tile.  Note the
        # split buys HBM-bandwidth-limited scaling, not 2x compute scaling.
        alt = max(strip, _round_up(pl.cdiv(oh, nt + 1), strip))
        if pl.cdiv(oh, alt) % 2 == 0:
            tile_oh, nt = alt, pl.cdiv(oh, alt)

    hbpt = tile_oh // halo                         # halo-block stride per tile
    max_hb = (H - 1) // halo                       # clamp: halo start stays in bounds

    w_flat = weight.astype(jnp.float32).reshape(-1)
    b_vec = jnp.asarray(bias, jnp.float32).reshape(-1)

    kernel = _make_conv2d_kernel(kh, kw, tile_oh, owp, halo, strip)

    # No HBM-side padded copy of `x` and no output slice-back: boundary blocks
    # run past the array edges (Pallas fetches only the in-bounds region; the
    # unspecified remainder only feeds output rows/cols dropped on writeback),
    # and the clamped halo index_map never starts out of bounds.
    return pl.pallas_call(
        kernel,
        out_shape=jax.ShapeDtypeStruct((oh, ow), x.dtype),
        grid=(nt,),
        in_specs=[
            pl.BlockSpec(memory_space=pltpu.MemorySpace.SMEM),     # flat weights
            pl.BlockSpec(memory_space=pltpu.MemorySpace.SMEM),     # bias
            pl.BlockSpec((tile_oh, wp), lambda t: (t, 0)),         # main rows
            pl.BlockSpec((halo, wp),                               # row halo
                         lambda t: (jnp.minimum((t + 1) * hbpt, max_hb), 0)),
        ],
        out_specs=pl.BlockSpec((tile_oh, owp), lambda t: (t, 0)),
        scratch_shapes=[pltpu.VMEM((strip + halo, wp), jnp.float32)],
        compiler_params=pltpu.CompilerParams(
            dimension_semantics=("parallel",),
            vmem_limit_bytes=vmem_limit,
        ),
    )(w_flat, b_vec, x, x)


def corr2d_ref(x, k):
    """Plain-JAX reference for sanity checking."""
    kh, kw = k.shape
    oh, ow = x.shape[0] - kh + 1, x.shape[1] - kw + 1
    out = jnp.zeros((oh, ow), jnp.float32)
    for i in range(kh):
        for j in range(kw):
            out = out + k[i, j] * x[i:i + oh, j:j + ow]
    return out


if __name__ == "__main__":
    key = jax.random.PRNGKey(0)
    kx, kw_key = jax.random.split(key)

    # Shapes consistent with the module's forward: raw 2D input, 3x3 kernel.
    H, W = 16, 16
    kernel_size = (3, 3)

    x = jax.random.normal(kx, (H, W), dtype=jnp.float32)
    weight = jax.random.uniform(kw_key, kernel_size, dtype=jnp.float32)   # torch.rand
    bias = jnp.zeros((1,), dtype=jnp.float32)                             # torch.zeros(1)

    # Small tile so the demo exercises a multi-step grid (2 row tiles).
    out = conv2d_pallas(x, weight, bias, tile_oh=8)
    out = jax.block_until_ready(out)
    ref = corr2d_ref(x, weight) + bias[0]
    assert out.shape == (H - kernel_size[0] + 1, W - kernel_size[1] + 1)
    assert jnp.allclose(out, ref, atol=1e-5, rtol=1e-5)

    # Case where the row halo is genuinely consumed on the last tile
    # (nt * tile_oh < H), so the halo data path and the clamped index_map
    # are both exercised with real data.
    k2, k3 = jax.random.split(kw_key)
    x3 = jax.random.normal(k2, (18, 20), dtype=jnp.float32)
    out3 = jax.block_until_ready(conv2d_pallas(x3, weight, bias, tile_oh=8))
    ref3 = corr2d_ref(x3, weight) + bias[0]
    assert out3.shape == ref3.shape
    assert jnp.allclose(out3, ref3, atol=1e-5, rtol=1e-5)

    # Larger odd-shaped case with a non-square kernel and default (budget-based)
    # tiling: exercises the interior fori_loop strips and ragged edges with no
    # HBM padding copy and no output slice-back.
    k4, k5 = jax.random.split(k3)
    x2 = jax.random.normal(k4, (300, 200), dtype=jnp.float32)
    w2 = jax.random.uniform(k5, (2, 4), dtype=jnp.float32)
    b2 = jnp.full((1,), 0.25, dtype=jnp.float32)
    out2 = jax.block_until_ready(conv2d_pallas(x2, w2, b2))
    ref2 = corr2d_ref(x2, w2) + b2[0]
    assert out2.shape == ref2.shape
    assert jnp.allclose(out2, ref2, atol=1e-4, rtol=1e-4)

    print("KERNEL_OK")
</pallas_src>

<mosaic_0001>
module attributes {stable_mosaic.version = 11 : i64} {
  func.func @kernel(%arg0: i32, %arg1: memref<9xf32, #tpu.memory_space<smem>>, %arg2: memref<1xf32, #tpu.memory_space<smem>>, %arg3: memref<8x256xf32, #tpu.memory_space<vmem>>, %arg4: memref<8x256xf32, #tpu.memory_space<vmem>>, %arg5: memref<8x128xf32, #tpu.memory_space<vmem>>, %arg6: memref<16x256xf32, #tpu.memory_space<vmem>>) attributes {dimension_semantics = [#tpu.dimension_semantics<parallel>], iteration_bounds = array<i64: 2>, scalar_prefetch = 0 : i64, scratch_operands = 1 : i64, tpu.core_type = #tpu.core_type<tc>, window_params = [{transform_indices = @transform_0, window_bounds = array<i64: 9>}, {transform_indices = @transform_1, window_bounds = array<i64: 1>}, {transform_indices = @transform_2, window_bounds = array<i64: 8, 256>}, {transform_indices = @transform_3, window_bounds = array<i64: 8, 256>}, {transform_indices = @transform_4, window_bounds = array<i64: 8, 128>}]} {
    %c0 = arith.constant 0 : index
    %0 = memref.load %arg1[%c0] : memref<9xf32, #tpu.memory_space<smem>>
    %c1 = arith.constant 1 : index
    %1 = memref.load %arg1[%c1] : memref<9xf32, #tpu.memory_space<smem>>
    %c2 = arith.constant 2 : index
    %2 = memref.load %arg1[%c2] : memref<9xf32, #tpu.memory_space<smem>>
    %c3 = arith.constant 3 : index
    %3 = memref.load %arg1[%c3] : memref<9xf32, #tpu.memory_space<smem>>
    %c4 = arith.constant 4 : index
    %4 = memref.load %arg1[%c4] : memref<9xf32, #tpu.memory_space<smem>>
    %c5 = arith.constant 5 : index
    %5 = memref.load %arg1[%c5] : memref<9xf32, #tpu.memory_space<smem>>
    %c6 = arith.constant 6 : index
    %6 = memref.load %arg1[%c6] : memref<9xf32, #tpu.memory_space<smem>>
    %c7 = arith.constant 7 : index
    %7 = memref.load %arg1[%c7] : memref<9xf32, #tpu.memory_space<smem>>
    %c8 = arith.constant 8 : index
    %8 = memref.load %arg1[%c8] : memref<9xf32, #tpu.memory_space<smem>>
    %c0_0 = arith.constant 0 : index
    %9 = memref.load %arg2[%c0_0] : memref<1xf32, #tpu.memory_space<smem>>
    %c0_i32 = arith.constant 0 : i32
    %c0_i32_1 = arith.constant 0 : i32
    %10 = arith.addi %c0_i32, %c0_i32_1 : i32
    %c1_i32 = arith.constant 1 : i32
    scf.for %arg7 = %c0_i32 to %10 step %c1_i32  : i32 {
      %c8_i32 = arith.constant 8 : i32
      %55 = arith.muli %arg7, %c8_i32 : i32
      %56 = tpu.assume_multiple %55, 8 : i32
      %cst_31 = arith.constant 0.000000e+00 : f32
      %57 = vector.broadcast %cst_31 : f32 to vector<8x128xf32>
      %c0_i32_32 = arith.constant 0 : i32
      %58 = arith.addi %56, %c0_i32_32 : i32
      %59 = arith.index_cast %58 : i32 to index
      %c0_33 = arith.constant 0 : index
      %60 = vector.load %arg3[%59, %c0_33] : memref<8x256xf32, #tpu.memory_space<vmem>>, vector<8x128xf32>
      %61 = vector.broadcast %0 : f32 to vector<8x128xf32>
      %62 = arith.mulf %61, %60 : vector<8x128xf32>
      %63 = arith.addf %57, %62 : vector<8x128xf32>
      %c0_i32_34 = arith.constant 0 : i32
      %64 = arith.addi %56, %c0_i32_34 : i32
      %65 = arith.index_cast %64 : i32 to index
      %c1_35 = arith.constant 1 : index
      %66 = vector.load %arg3[%65, %c1_35] : memref<8x256xf32, #tpu.memory_space<vmem>>, vector<8x128xf32>
      %67 = vector.broadcast %1 : f32 to vector<8x128xf32>
      %68 = arith.mulf %67, %66 : vector<8x128xf32>
      %69 = arith.addf %63, %68 : vector<8x128xf32>
      %c0_i32_36 = arith.constant 0 : i32
      %70 = arith.addi %56, %c0_i32_36 : i32
      %71 = arith.index_cast %70 : i32 to index
      %c2_37 = arith.constant 2 : index
      %72 = vector.load %arg3[%71, %c2_37] : memref<8x256xf32, #tpu.memory_space<vmem>>, vector<8x128xf32>
      %73 = vector.broadcast %2 : f32 to vector<8x128xf32>
      %74 = arith.mulf %73, %72 : vector<8x128xf32>
      %75 = arith.addf %69, %74 : vector<8x128xf32>
      %c1_i32_38 = arith.constant 1 : i32
      %76 = arith.addi %56, %c1_i32_38 : i32
      %77 = arith.index_cast %76 : i32 to index
      %c0_39 = arith.constant 0 : index
      %78 = vector.load %arg3[%77, %c0_39] : memref<8x256xf32, #tpu.memory_space<vmem>>, vector<8x128xf32>
      %79 = vector.broadcast %3 : f32 to vector<8x128xf32>
      %80 = arith.mulf %79, %78 : vector<8x128xf32>
      %81 = arith.addf %75, %80 : vector<8x128xf32>
      %c1_i32_40 = arith.constant 1 : i32
      %82 = arith.addi %56, %c1_i32_40 : i32
      %83 = arith.index_cast %82 : i32 to index
      %c1_41 = arith.constant 1 : index
      %84 = vector.load %arg3[%83, %c1_41] : memref<8x256xf32, #tpu.memory_space<vmem>>, vector<8x128xf32>
      %85 = vector.broadcast %4 : f32 to vector<8x128xf32>
      %86 = arith.mulf %85, %84 : vector<8x128xf32>
      %87 = arith.addf %81, %86 : vector<8x128xf32>
      %c1_i32_42 = arith.constant 1 : i32
      %88 = arith.addi %56, %c1_i32_42 : i32
      %89 = arith.index_cast %88 : i32 to index
      %c2_43 = arith.constant 2 : index
      %90 = vector.load %arg3[%89, %c2_43] : memref<8x256xf32, #tpu.memory_space<vmem>>, vector<8x128xf32>
      %91 = vector.broadcast %5 : f32 to vector<8x128xf32>
      %92 = arith.mulf %91, %90 : vector<8x128xf32>
      %93 = arith.addf %87, %92 : vector<8x128xf32>
      %c2_i32 = arith.constant 2 : i32
      %94 = arith.addi %56, %c2_i32 : i32
      %95 = arith.index_cast %94 : i32 to index
      %c0_44 = arith.constant 0 : index
      %96 = vector.load %arg3[%95, %c0_44] : memref<8x256xf32, #tpu.memory_space<vmem>>, vector<8x128xf32>
      %97 = vector.broadcast %6 : f32 to vector<8x128xf32>
      %98 = arith.mulf %97, %96 : vector<8x128xf32>
      %99 = arith.addf %93, %98 : vector<8x128xf32>
      %c2_i32_45 = arith.constant 2 : i32
      %100 = arith.addi %56, %c2_i32_45 : i32
      %101 = arith.index_cast %100 : i32 to index
      %c1_46 = arith.constant 1 : index
      %102 = vector.load %arg3[%101, %c1_46] : memref<8x256xf32, #tpu.memory_space<vmem>>, vector<8x128xf32>
      %103 = vector.broadcast %7 : f32 to vector<8x128xf32>
      %104 = arith.mulf %103, %102 : vector<8x128xf32>
      %105 = arith.addf %99, %104 : vector<8x128xf32>
      %c2_i32_47 = arith.constant 2 : i32
      %106 = arith.addi %56, %c2_i32_47 : i32
      %107 = arith.index_cast %106 : i32 to index
      %c2_48 = arith.constant 2 : index
      %108 = vector.load %arg3[%107, %c2_48] : memref<8x256xf32, #tpu.memory_space<vmem>>, vector<8x128xf32>
      %109 = vector.broadcast %8 : f32 to vector<8x128xf32>
      %110 = arith.mulf %109, %108 : vector<8x128xf32>
      %111 = arith.addf %105, %110 : vector<8x128xf32>
      %112 = vector.broadcast %9 : f32 to vector<8x128xf32>
      %113 = arith.addf %111, %112 : vector<8x128xf32>
      %114 = arith.index_cast %56 : i32 to index
      %c0_49 = arith.constant 0 : index
      %115 = vector.load %arg5[%114, %c0_49] : memref<8x128xf32, #tpu.memory_space<vmem>>, vector<8x128xf32>
      tpu.vector_store %arg5[%114, %c0_49], %113 {strides = array<i32>} : memref<8x128xf32, #tpu.memory_space<vmem>>, vector<8x128xf32>,
    }
    %c0_i32_2 = arith.constant 0 : i32
    %c0_3 = arith.constant 0 : index
    %c0_4 = arith.constant 0 : index
    %11 = vector.load %arg3[%c0_3, %c0_4] : memref<8x256xf32, #tpu.memory_space<vmem>>, vector<8x256xf32>
    %c0_5 = arith.constant 0 : index
    %c0_6 = arith.constant 0 : index
    %12 = vector.load %arg6[%c0_5, %c0_6] : memref<16x256xf32, #tpu.memory_space<vmem>>, vector<8x256xf32>
    tpu.vector_store %arg6[%c0_5, %c0_6], %11 {strides = array<i32>} : memref<16x256xf32, #tpu.memory_space<vmem>>, vector<8x256xf32>,
    %c0_7 = arith.constant 0 : index
    %c0_8 = arith.constant 0 : index
    %13 = vector.load %arg4[%c0_7, %c0_8] : memref<8x256xf32, #tpu.memory_space<vmem>>, vector<8x256xf32>
    %c8_9 = arith.constant 8 : index
    %c0_10 = arith.constant 0 : index
    %14 = vector.load %arg6[%c8_9, %c0_10] : memref<16x256xf32, #tpu.memory_space<vmem>>, vector<8x256xf32>
    tpu.vector_store %arg6[%c8_9, %c0_10], %13 {strides = array<i32>} : memref<16x256xf32, #tpu.memory_space<vmem>>, vector<8x256xf32>,
    %cst = arith.constant 0.000000e+00 : f32
    %15 = vector.broadcast %cst : f32 to vector<8x128xf32>
    %c0_11 = arith.constant 0 : index
    %c0_12 = arith.constant 0 : index
    %16 = vector.load %arg6[%c0_11, %c0_12] : memref<16x256xf32, #tpu.memory_space<vmem>>, vector<8x128xf32>
    %17 = vector.broadcast %0 : f32 to vector<8x128xf32>
    %18 = arith.mulf %17, %16 : vector<8x128xf32>
    %19 = arith.addf %15, %18 : vector<8x128xf32>
    %c0_13 = arith.constant 0 : index
    %c1_14 = arith.constant 1 : index
    %20 = vector.load %arg6[%c0_13, %c1_14] : memref<16x256xf32, #tpu.memory_space<vmem>>, vector<8x128xf32>
    %21 = vector.broadcast %1 : f32 to vector<8x128xf32>
    %22 = arith.mulf %21, %20 : vector<8x128xf32>
    %23 = arith.addf %19, %22 : vector<8x128xf32>
    %c0_15 = arith.constant 0 : index
    %c2_16 = arith.constant 2 : index
    %24 = vector.load %arg6[%c0_15, %c2_16] : memref<16x256xf32, #tpu.memory_space<vmem>>, vector<8x128xf32>
    %25 = vector.broadcast %2 : f32 to vector<8x128xf32>
    %26 = arith.mulf %25, %24 : vector<8x128xf32>
    %27 = arith.addf %23, %26 : vector<8x128xf32>
    %c1_17 = arith.constant 1 : index
    %c0_18 = arith.constant 0 : index
    %28 = vector.load %arg6[%c1_17, %c0_18] : memref<16x256xf32, #tpu.memory_space<vmem>>, vector<8x128xf32>
    %29 = vector.broadcast %3 : f32 to vector<8x128xf32>
    %30 = arith.mulf %29, %28 : vector<8x128xf32>
    %31 = arith.addf %27, %30 : vector<8x128xf32>
    %c1_19 = arith.constant 1 : index
    %c1_20 = arith.constant 1 : index
    %32 = vector.load %arg6[%c1_19, %c1_20] : memref<16x256xf32, #tpu.memory_space<vmem>>, vector<8x128xf32>
    %33 = vector.broadcast %4 : f32 to vector<8x128xf32>
    %34 = arith.mulf %33, %32 : vector<8x128xf32>
    %35 = arith.addf %31, %34 : vector<8x128xf32>
    %c1_21 = arith.constant 1 : index
    %c2_22 = arith.constant 2 : index
    %36 = vector.load %arg6[%c1_21, %c2_22] : memref<16x256xf32, #tpu.memory_space<vmem>>, vector<8x128xf32>
    %37 = vector.broadcast %5 : f32 to vector<8x128xf32>
    %38 = arith.mulf %37, %36 : vector<8x128xf32>
    %39 = arith.addf %35, %38 : vector<8x128xf32>
    %c2_23 = arith.constant 2 : index
    %c0_24 = arith.constant 0 : index
    %40 = vector.load %arg6[%c2_23, %c0_24] : memref<16x256xf32, #tpu.memory_space<vmem>>, vector<8x128xf32>
    %41 = vector.broadcast %6 : f32 to vector<8x128xf32>
    %42 = arith.mulf %41, %40 : vector<8x128xf32>
    %43 = arith.addf %39, %42 : vector<8x128xf32>
    %c2_25 = arith.constant 2 : index
    %c1_26 = arith.constant 1 : index
    %44 = vector.load %arg6[%c2_25, %c1_26] : memref<16x256xf32, #tpu.memory_space<vmem>>, vector<8x128xf32>
    %45 = vector.broadcast %7 : f32 to vector<8x128xf32>
    %46 = arith.mulf %45, %44 : vector<8x128xf32>
    %47 = arith.addf %43, %46 : vector<8x128xf32>
    %c2_27 = arith.constant 2 : index
    %c2_28 = arith.constant 2 : index
    %48 = vector.load %arg6[%c2_27, %c2_28] : memref<16x256xf32, #tpu.memory_space<vmem>>, vector<8x128xf32>
    %49 = vector.broadcast %8 : f32 to vector<8x128xf32>
    %50 = arith.mulf %49, %48 : vector<8x128xf32>
    %51 = arith.addf %47, %50 : vector<8x128xf32>
    %52 = vector.broadcast %9 : f32 to vector<8x128xf32>
    %53 = arith.addf %51, %52 : vector<8x128xf32>
    %c0_29 = arith.constant 0 : index
    %c0_30 = arith.constant 0 : index
    %54 = vector.load %arg5[%c0_29, %c0_30] : memref<8x128xf32, #tpu.memory_space<vmem>>, vector<8x128xf32>
    tpu.vector_store %arg5[%c0_29, %c0_30], %53 {strides = array<i32>} : memref<8x128xf32, #tpu.memory_space<vmem>>, vector<8x128xf32>,
    return
  }
  func.func @transform_0(%arg0: i32) -> i32 {
    %c0_i32 = arith.constant 0 : i32
    %c0_i32_0 = arith.constant 0 : i32
    return %c0_i32 : i32
  }
  func.func @transform_1(%arg0: i32) -> i32 {
    %c0_i32 = arith.constant 0 : i32
    %c0_i32_0 = arith.constant 0 : i32
    return %c0_i32 : i32
  }
  func.func @transform_2(%arg0: i32) -> (i32, i32) {
    %c0_i32 = arith.constant 0 : i32
    %c0_i32_0 = arith.constant 0 : i32
    return %arg0, %c0_i32 : i32, i32
  }
  func.func @transform_3(%arg0: i32) -> (i32, i32) {
    %c1_i32 = arith.constant 1 : i32
    %0 = arith.addi %arg0, %c1_i32 : i32
    %c1_i32_0 = arith.constant 1 : i32
    %1 = arith.muli %0, %c1_i32_0 : i32
    %c1_i32_1 = arith.constant 1 : i32
    %2 = arith.minsi %1, %c1_i32_1 : i32
    %c0_i32 = arith.constant 0 : i32
    %c0_i32_2 = arith.constant 0 : i32
    return %2, %c0_i32 : i32, i32
  }
  func.func @transform_4(%arg0: i32) -> (i32, i32) {
    %c0_i32 = arith.constant 0 : i32
    %c0_i32_0 = arith.constant 0 : i32
    return %arg0, %c0_i32 : i32, i32
  }
}

</mosaic_0001>

<bundles_post_ra>
// kernel: tpu_custom_call.1
= control target key start
LH: loop header
LB: loop body
LE: loop exit
PB: predicated region body
PF: predicated region fallthrough
CT: control target
= control target key end

     0   :  { %s1128_s0 = inlined_call_operand.vmem [shape: f32[9], index: 0, kind: input, shape index: {}]   ;;  %s1129_s1 = inlined_call_operand.<no memory space> [shape: f32[1], index: 1, kind: input, shape index: {}]   ;;  %s1130_s2 = inlined_call_operand.hbm [shape: f32[16,16], index: 2, kind: input, shape index: {}]   ;;  %s1131_s3 = inlined_call_operand.hbm [shape: f32[16,16], index: 3, kind: input, shape index: {}]   ;;  %s1132_s4 = inlined_call_operand.hbm [shape: f32[14,14], index: 4, kind: output, shape index: {}]  }
   0x1   :  { %1138 = sst [smem:[#allocation20_spill]] %s1128_s0 }
   0x2   :  { %9 = sst [smem:[#allocation3]] %s1129_s1 }
   0x3   :  { %10 = vsyncpa [#allocation7], 0 }
   0x4   :  { %11 = vsyncpa [#allocation5], 0 }
   0x5   :  { %13 = vsyncpa [#allocation5 + $0x1], 0 }
   0x6   :  { %14 = vsyncpa [#allocation10], 0 }
   0x7   :  { %16 = vsyncpa [#allocation10 + $0x1], 0 }
   0x8   :  { %17 = vsyncpa [#allocation6], 0 }
   0x9   :  { %19 = vsyncpa [#allocation6 + $0x1], 0  ;;  %s873_s17 = smov 0   ;;  %s875_s18 = smov 0  }
   0xa   :  { %s877_s19 = smov 0   ;;  %s879_s20 = smov 0  }
   0xb   :  { %s881_s21 = smov 0   ;;  %s883_s22 = smov 0  }
   0xc   :  { %s885_s1 = smov 0  }
   0xd LB: > { %1139 = sst [smem:[#allocation16_spill]] %s836_s22  ;;  %s909_s23 = sadd.s32 4294967295, %s840_s1   ;;  %s840_s1 = sphi %s885_s1, %s1154_s1   ;;  %s836_s22 = sphi %s883_s22, %s1157_s22   ;;  %s832_s21 = sphi %s881_s21, %s1162_s21   ;;  %s828_s20 = sphi %s879_s20, %s1161_s20   ;;  %s824_s19 = sphi %s877_s19, %s1160_s19   ;;  %s820_s18 = sphi %s875_s18, %s1159_s18   ;;  %s816_s17 = sphi %s873_s17, %s1158_s17  }
   0xe   : > { %s576_s24 = sadd.s32 4294967294, %s840_s1   ;;  %s913_s25 = sadd.s32 1, %s840_s1  }
   0xf   : > { %1140 = sst [smem:[#allocation17_spill]] %s913_s25  ;;  %s74_s26 = sadd.s32 1, %s836_s22 }
  0x10   : > { %s71_s27 = ssub.s32 %s840_s1, %s913_s25  ;;  %p81_p0 = scmp.ne.s32.totalorder %s836_s22, %s832_s21 }
  0x11   : > { %p72_p1 = scmp.eq.s32.totalorder %s71_s27, 0  ;;  %p82_p2 = scmp.eq.s32.totalorder %s840_s1, 0 }
  0x12   : > { %p1133_p3 = scmp.ne.s32.totalorder %s832_s21, %s828_s20  ;;  %p88_p4 = scmp.eq.s32.totalorder %s909_s23, 0 }
  0x13   : > { %s925_s28 = scalar_select %p72_p1, %s836_s22, %s74_s26  }
  0x14   : > { %p932_p5 = por %p82_p2, %p81_p0  ;;  %p941_p6 = por %p88_p4, %p1133_p3 }
  0x15   : > { %1141 = sst [smem:[#allocation18_spill]] %s925_s28  ;;  %p98_p7 = scmp.lt.s32.totalorder %s913_s25, 1 }
  0x16   : > { %s1142_s29 = scalar_select %p932_p5, 1, 0 }
  0x17   : > { %s1143_s30 = scalar_select %p941_p6, 1, 0 }
  0x18   : > { %s100_s5 = sadd.s32 1, %s913_s25  ;;  %s106_s6 = sadd.s32 1, %s824_s19 }
  0x19   : > { %p101_p8 = scmp.lt.s32.totalorder %s100_s5, 1  ;;  %p113_p9 = scmp.ne.s32.totalorder %s824_s19, %s820_s18 }
  0x1a   : > { %s949_s7 = scalar_select %p98_p7, %s913_s25, 1 }
  0x1b   : > { %s1164_s5 = smov (!%p101_p8, %s100_s5), 1  ;;  %p119_p10 = scmp.ne.s32.totalorder %s820_s18, %s816_s17 }
  0x1c   : > { %s103_s8 = ssub.s32 %s949_s7, %s1164_s5  ;;  %p143_p11 = scmp.eq.s32.totalorder %s909_s23, 1 }
  0x1d   : > { %p104_p12 = scmp.eq.s32.totalorder %s103_s8, 0  ;;  %p959_p13 = por %p113_p9, %p82_p2 }
  0x1e   : > { %p965_p1 = por %p119_p10, %p88_p4  ;;  %p972_p7 = por %p143_p11, %p81_p0 }
  0x1f   : > { %s977_s12 = scalar_select %p104_p12, %s824_s19, %s106_s6  }
  0x20   : > { %p149_p8 = scmp.eq.s32.totalorder %s576_s24, 1  ;;  %p577_p3 = scmp.ge.s32.totalorder %s840_s1, 1 }
  0x21   : > { %1147 = sst [smem:[#allocation19_spill]] %s977_s12  ;;  %p156_p6 = scmp.lt.s32.totalorder %s840_s1, 3 }
  0x22   : > { %p1148_p5 = scmp.ne.s32.totalorder %s832_s21, %s828_s20  ;;  %s1151_s0 = sld [smem:[#allocation20_spill]] }
  0x23   : > { %p988_p9 = pnand %p577_p3, %p156_p6  ;;  %s842_s24 = smov [#allocation4]  }
  0x24   : > { %p984_p2 = por %p149_p8, %p1148_p5  ;;  %p579_p5 = scmp.ge.s32.totalorder %s840_s1, 2 }
  0x25   : > { %p609_p0 = pneg %p988_p9  ;;  %p1152_p3 = scmp.ne.s32.totalorder (!%p579_p5), %s1142_s29, 0 }
  0x26   : > { %178 = sbr.rel (%p579_p5) target bundleno = 79 (0x4f), region = 24 }
  0x27   : > { %p610_p10 = pnand %p609_p0, %p88_p4 }
  0x28   : > { %s168_s17 = sshll.u32 %s1151_s0, 4  ;;  %s169_s17 = int_to_ptr.vmem [resolvable:$true] %s168_s17 }
  0x29   : > { %612 = dma.vmem_to_smem (!%p610_p10), %s169_s17, 16, %s842_s24, [#allocation7]  }
  0x2b   : > { %181 = sbr.rel (!%p1152_p3) target bundleno = 61 (0x3d), region = 28  ;;  %s182_s26 = sand.u32 (%p1152_p3), 1, %s836_s22  }
  0x2c   : > { %s580_s27 = sshll.u32 (%p1152_p3), %s182_s26, 4  ;;  %s183_s5 = scalar_lea.sflag (%p1152_p3), [#allocation5], %s182_s26 }
  0x2d   : > { %s186_s6 = scalar_lea.vmem (%p1152_p3), [#allocation8], %s580_s27 }
  0x30   : > { %188 = vsyncadd %s183_s5, 128  ;;  %s581_s8 = sshll.u32 %s840_s1, 3  ;;  %s194_s15 = sshll.u32 %s186_s6, 4  ;;  %s195_s15 = int_to_ptr.vmem [resolvable:$true] %s194_s15 }
  0x31   : > { %s190_s17 = scalar_lea.hbm %s1130_s2, %s581_s8  ;;  %s698_s26 = scalar_lea.hbm %s1130_s2, 16 }
  0x32   : > { %s192_s24 = sshll.u32 %s190_s17, 4  ;;  %s193_s24 = int_to_ptr.hbm [resolvable:$true] %s192_s24 }
  0x33   : > { %s694_s28 = sshra.s32 %s193_s24, 4  ;;  %s695_s28 = int_to_ptr.hbm [resolvable:$true] %s694_s28 }
  0x34   : > { %s696_s29 = scalar_lea.hbm %s695_s28, 8  ;;  %p699_p11 = scmp.lt.s32.totalorder %s695_s28, %s1130_s2 }
  0x35   : > { %p697_p6 = scmp.ne.s32.totalorder %s695_s28, %s696_s29  ;;  %p700_p12 = scmp.lt.s32.totalorder %s698_s26, %s696_s29 }
  0x37   : > { %p701_p8 = por %p700_p12, %p699_p11 }
  0x39   : > { %p702_p0 = pnand %p701_p8, %p697_p6 }
  0x3b   : > { %705 = shalt.err (!%p702_p0)
}
  0x3c   : > { %197 = dma.hbm_to_vmem [thread:$0]  %s193_s24, 128, %s195_s15, %s183_s5  }
  0x3d PF: > { %200 = sbr.rel (!%p959_p13) target bundleno = 79 (0x4f), region = 32  ;;  %s201_s0 = sand.u32 (%p959_p13), 1, %s824_s19  }
  0x3e   : > { %s582_s6 = sshll.u32 (%p959_p13), %s201_s0, 4  ;;  %s202_s8 = scalar_lea.sflag (%p959_p13), [#allocation10], %s201_s0 }
  0x3f   : > { %s205_s16 = scalar_lea.vmem (%p959_p13), [#allocation9], %s582_s6 }
  0x42   : > { %210 = vsyncadd %s202_s8, 128  ;;  %s583_s22 = sshll.u32 %s949_s7, 3  ;;  %s216_s12 = sshll.u32 %s205_s16, 4  ;;  %s217_s12 = int_to_ptr.vmem [resolvable:$true] %s216_s12 }
  0x43   : > { %s212_s17 = scalar_lea.hbm %s1131_s3, %s583_s22  ;;  %s722_s26 = scalar_lea.hbm %s1131_s3, 16 }
  0x44   : > { %s214_s29 = sshll.u32 %s212_s17, 4  ;;  %s215_s29 = int_to_ptr.hbm [resolvable:$true] %s214_s29 }
  0x45   : > { %s718_s5 = sshra.s32 %s215_s29, 4  ;;  %s719_s5 = int_to_ptr.hbm [resolvable:$true] %s718_s5 }
  0x46   : > { %s720_s9 = scalar_lea.hbm %s719_s5, 8  ;;  %p723_p10 = scmp.lt.s32.totalorder %s719_s5, %s1131_s3 }
  0x47   : > { %p721_p13 = scmp.ne.s32.totalorder %s719_s5, %s720_s9  ;;  %p724_p3 = scmp.lt.s32.totalorder %s722_s26, %s720_s9 }
  0x49   : > { %p725_p6 = por %p724_p3, %p723_p10 }
  0x4b   : > { %p726_p11 = pnand %p725_p6, %p721_p13 }
  0x4d   : > { %729 = shalt.err (!%p726_p11)
}
  0x4e   : > { %219 = dma.hbm_to_vmem [thread:$0]  %s215_s29, 128, %s217_s12, %s202_s8  }
  0x4f PF: > { %225 = sbr.rel (%p988_p9) target bundleno = 254 (0xfe), region = 36 }
  0x54   : > { %799 = dma.done.wait (%p88_p4), [#allocation7], 16  }
  0x55   : > { %801 = vsyncadd (%p88_p4), [#allocation7], 4294967280  ;;  %s1035_s7 = sand.u32 1, %s832_s21   ;;  %p1153_p12 = scmp.ne.s32.totalorder %s1143_s30, 0 }
  0x56   : > { %s586_s6 = sshll.u32 %s1035_s7, 4  ;;  %s233_s16 = scalar_lea.sflag [#allocation5], %s1035_s7 }
  0x57   : > { %s236_s8 = scalar_lea.vmem [#allocation8], %s586_s6 }
  0x58   : > { %803 = dma.done.wait (%p1153_p12), %s233_s16, 256  }
  0x59   : > { %805 = vsyncadd (%p1153_p12), %s233_s16, 4294967040  ;;  %s242_s14 = sand.u32 1, %s820_s18  }
  0x5a   : > { %s587_s22 = sshll.u32 %s242_s14, 4  ;;  %s243_s12 = scalar_lea.sflag [#allocation10], %s242_s14 }
  0x5b   : > { %s246_s25 = scalar_lea.vmem [#allocation9], %s587_s22 }
  0x5c   : > { %807 = dma.done.wait (%p965_p1), %s243_s12, 256  }
  0x5d   : > { %809 = vsyncadd (%p965_p1), %s243_s12, 4294967040 }
  0x5e   : > { %252 = sfence }
  0x5f   : > { %s1048_s28 = sld [smem:[#allocation4 + $0x2]]  ;;  %v1050_v0 = vld [vmem:[%s236_s8] sm:$0xff]  ;;  %v292_v1 = vld [vmem:[%s236_s8 + $0x8] sm:$0xff]  ;;  %s843_s10 = smov 126   ;;  %vm337_vm0 = vcmask 1046528   ;;  %vm398_vm1 = vcmask 1045504  }
  0x60   : > { %v296_v2 = vld [vmem:[%s246_s25 + $0x8] sm:$0xff]  ;;  %293 = vst [vmem:[#allocation2 + $0x10] sm:$0xff] %v1050_v0  ;;  %s589_s30 = sld [smem:[#allocation4 + $0x1]]  ;;  %v295_v3 = vld [vmem:[%s246_s25] sm:$0xff]  ;;  %s844_s5 = smov 127   ;;  %vm313_vm2 = vcmask 1039360  }
  0x61   : > { %294 = vst [vmem:[#allocation2] sm:$0xff] %v292_v1  ;;  %s593_s17 = sld [smem:[#allocation4 + $0x5]]  ;;  %vm326_vm3 = vcmask 1031168   ;;  %s588_s6 = sshll.u32 %s1035_s7, 3 }
  0x62   : > { %298 = vst [vmem:[#allocation2 + $0x8] sm:$0xff] %v296_v2  ;;  %s592_s29 = sld [smem:[#allocation4 + $0x4]]  ;;  %s598_s16 = sshll.u32 %s909_s23, 3 }
  0x63   : > { %297 = vst [vmem:[#allocation2 + $0x18] sm:$0xff] %v295_v3  ;;  %s596_s9 = sld [smem:[#allocation4 + $0x8]]  ;;  %s466_s22 = scalar_lea.hbm %s1132_s4, %s598_s16 }
  0x64   : > { %s595_s15 = sld [smem:[#allocation4 + $0x7]]  ;;  %s277_s12 = scalar_lea.vmem [#allocation11], %s588_s6 }
  0x65   : > { %v317_v4 = vstv %s1048_s28  ;;  %s591_s24 = sld [smem:[#allocation4 + $0x3]]  ;;  %s468_s25 = sshll.u32 %s277_s12, 4  ;;  %s469_s25 = int_to_ptr.vmem [resolvable:$true] %s468_s25 }
  0x66   : > { %v318_v5 = vmul.f32 %v317_v4, %v1050_v0  ;;  %v304_v6 = vstv %s589_s30  ;;  %v319_v17 = vmul.f32 %v317_v4, %v292_v1  ;;  %s281_s26 = sld [smem:[#allocation4]]  ;;  %s470_s28 = sshll.u32 %s466_s22, 4  ;;  %s471_s28 = int_to_ptr.hbm [resolvable:$true] %s470_s28 }
  0x67   : > { %v305_v7 = vmul.f32 %v304_v6, %v1050_v0  ;;  %v343_v8 = vld [vmem:[#allocation2 + $0x10] sm:$0xfe]  ;;  %v369_v12 = vstv %s593_s17  ;;  %v306_v20 = vmul.f32 %v304_v6, %v292_v1  ;;  %s594_s27 = sld [smem:[#allocation4 + $0x6]]  ;;  %s456_s23 = scalar_lea.sflag [#allocation6], %s1035_s7 }
  0x68   : > { %322 = vrot.lane.b32.xlu1 %v318_v5, %s843_s10  ;;  %v347_v9 = vstv %s592_s29  ;;  %v344_v10 = vld [vmem:[#allocation2] sm:$0xfe]  ;;  %v370_v24 = vmul.f32 %v369_v12, %v343_v8  ;;  %v404_v31 = vld [vmem:[#allocation2 + $0x10] sm:$0xfc]  ;;  %s290_s0 = sld [smem:[#allocation3]]  ;;  %s756_s30 = sshra.s32 %s471_s28, 4  ;;  %s757_s30 = int_to_ptr.hbm [resolvable:$true] %s756_s30 }
  0x69   : > { %309 = vrot.lane.b32.xlu0 %v305_v7, %s844_s5  ;;  %v346_v11 = vld [vmem:[#allocation2 + $0x8] sm:$0x1]  ;;  %v348_v13 = vmul.f32 %v347_v9, %v343_v8  ;;  %v371_v18 = vmul.f32 %v369_v12, %v344_v10  ;;  %v349_v22 = vmul.f32 %v347_v9, %v344_v10  ;;  %v430_v32 = vstv %s596_s9  ;;  %v405_v36 = vld [vmem:[#allocation2] sm:$0xfc]  ;;  %v330_v2 = vld [vmem:[#allocation2 + $0x10] sm:$0xfe]  ;;  %p763_p8 = scmp.lt.s32.totalorder %s757_s30, %s1132_s4 }
  0x6a   : > { %v345_v14 = vld [vmem:[#allocation2 + $0x18] sm:$0x1]  ;;  %v373_v19 = vmul.f32 %v369_v12, %v346_v11  ;;  %v351_v23 = vmul.f32 %v347_v9, %v346_v11  ;;  %v378_v33 = vrot.slane %v370_v24, 1  ;;  %v407_v37 = vld [vmem:[#allocation2 + $0x8] sm:$0x3]  ;;  %v408_v38 = vstv %s595_s15  ;;  %s758_s17 = scalar_lea.hbm %s757_s30, 8 }
  0x6b   : > { %v350_v15 = vmul.f32 %v347_v9, %v345_v14  ;;  %v356_v16 = vrot.slane %v348_v13, 1  ;;  %v372_v25 = vmul.f32 %v369_v12, %v345_v14  ;;  %v381_v27 = vrot.slane %v371_v18, 1  ;;  %v406_v35 = vld [vmem:[#allocation2 + $0x18] sm:$0x3]  ;;  %p759_p4 = scmp.ne.s32.totalorder %s757_s30, %s758_s17 }
  0x6c   : > { %v382_v28 = vrot.slane %v373_v19, 1  ;;  %v359_v29 = vrot.slane %v349_v22, 1  ;;  %v360_v30 = vrot.slane %v351_v23, 1  ;;  %v431_v40 = vmul.f32 %v430_v32, %v404_v31  ;;  %v331_v3 = vld [vmem:[#allocation2 + $0x18] sm:$0x1] }
  0x6d   : > { %v357_v21 = vrot.slane %v350_v15, 1  ;;  %v379_v34 = vrot.slane %v372_v25, 1  ;;  %v433_v42 = vmul.f32 %v430_v32, %v406_v35  ;;  %v409_v43 = vmul.f32 %v408_v38, %v404_v31  ;;  %p760_p1 = pnand %p759_p4, %p972_p7 }
  0x6e   : > { %v383_v39 = vsel %vm337_vm0, %v381_v27, %v382_v28  ;;  %v361_v41 = vsel %vm337_vm0, %v359_v29, %v360_v30  ;;  %v411_v44 = vmul.f32 %v408_v38, %v406_v35  ;;  %v410_v46 = vmul.f32 %v408_v38, %v405_v36 }
  0x6f   : > { %v358_v26 = vsel %vm337_vm0, %v356_v16, %v357_v21  ;;  %v380_v45 = vsel %vm337_vm0, %v378_v33, %v379_v34  ;;  %v412_v47 = vmul.f32 %v408_v38, %v407_v37  ;;  %v439_v48 = vrot.slane %v431_v40, 2  ;;  %v391_v16 = vld [vmem:[#allocation2 + $0x10] sm:$0xfc]  ;;  %p761_p9 = pneg %p760_p1 }
  0x70   : > { %324 = vrot.lane.b32.xlu1 %v319_v17, %s843_s10  ;;  %362 = vrot.lane.b32.xlu2 %v358_v26, %s844_s5  ;;  %v440_v49 = vrot.slane %v433_v42, 2  ;;  %v417_v50 = vrot.slane %v409_v43, 2  ;;  %v418_v51 = vrot.slane %v411_v44, 2  ;;  %v420_v52 = vrot.slane %v410_v46, 2  ;;  %v392_v17 = vld [vmem:[#allocation2 + $0x18] sm:$0x3] }
  0x71   : > { %311 = vrot.lane.b32.xlu0 %v306_v20, %s844_s5  ;;  %v421_v53 = vrot.slane %v412_v47, 2  ;;  %v432_v56 = vmul.f32 %v430_v32, %v405_v36  ;;  %v434_v57 = vmul.f32 %v430_v32, %v407_v37  ;;  %v332_v4 = vstv %s591_s24 }
  0x72   : > { %v441_v54 = vsel %vm398_vm1, %v439_v48, %v440_v49  ;;  %v419_v55 = vsel %vm398_vm1, %v417_v50, %v418_v51  ;;  %v300_v5 = vstv %s281_s26  ;;  %v333_v6 = vmul.f32 %v332_v4, %v330_v2 }
  0x73   : > { %v422_v58 = vsel %vm398_vm1, %v420_v52, %v421_v53  ;;  %v442_v59 = vrot.slane %v432_v56, 2  ;;  %v443_v60 = vrot.slane %v434_v57, 2  ;;  %v334_v7 = vmul.f32 %v332_v4, %v331_v3 }
  0x74   : > { %v301_v9 = vmul.f32 %v300_v5, %v1050_v0  ;;  %v338_v11 = vrot.slane %v333_v6, 1  ;;  %v393_v18 = vstv %s594_s27 }
  0x75   : > { %v444_v61 = vsel %vm398_vm1, %v442_v59, %v443_v60  ;;  %v339_v12 = vrot.slane %v334_v7, 1  ;;  %v394_v22 = vmul.f32 %v393_v18, %v391_v16  ;;  %v395_v23 = vmul.f32 %v393_v18, %v392_v17 }
  0x77   : > { %v340_v20 = vsel %vm337_vm0, %v338_v11, %v339_v12  ;;  %v399_v30 = vrot.slane %v394_v22, 2  ;;  %v400_v31 = vrot.slane %v395_v23, 2 }
  0x78   : > { %386 = vrot.lane.b32.xlu1 %v383_v39, %s843_s10  ;;  %364 = vrot.lane.b32.xlu2 %v361_v41, %s844_s5  ;;  %v452_v41 = vstv %s290_s0 }
  0x79   : > { %384 = vrot.lane.b32.xlu0 %v380_v45, %s843_s10  ;;  %v401_v33 = vsel %vm398_vm1, %v399_v30, %v400_v31 }
  0x80   : > { %445 = vrot.lane.b32.xlu1 %v441_v54, %s843_s10  ;;  %423 = vrot.lane.b32.xlu2 %v419_v55, %s844_s5 }
  0x81   : > { %425 = vrot.lane.b32.xlu0 %v422_v58, %s844_s5  ;;  %s762_s5 = scalar_lea.hbm %s1132_s4, 16 }
  0x82   : > { %p764_p0 = scmp.lt.s32.totalorder %s762_s5, %s758_s17 }
  0x84   : > { %p765_p13 = por %p764_p0, %p763_p8 }
  0x86   : > { %p766_p10 = pnand %p765_p13, %p761_p9 }
  0x88   : > { %447 = vrot.lane.b32.xlu2 %v444_v61, %s843_s10 }
  0xca   : > { %v363_v62 = vpop.permute.xlu2 %362 }
  0xd2   : > { %v365_v8 = vpop.permute.xlu2 %364 }
  0xd3   : > { %v366_v25 = vsel %vm313_vm2, %v363_v62, %v365_v8 }
  0xda   : > { %v323_v63 = vpop.permute.xlu1 %322  ;;  %v424_v0 = vpop.permute.xlu2 %423 }
  0xdb   : > { %v310_v1 = vpop.permute.xlu0 %309 }
  0xe2   : > { %v325_v10 = vpop.permute.xlu1 %324  ;;  %v448_v34 = vpop.permute.xlu2 %447 }
  0xe3   : > { %v312_v13 = vpop.permute.xlu0 %311  ;;  %v327_v19 = vsel %vm326_vm3, %v323_v63, %v325_v10 }
  0xe4   : > { %v314_v14 = vsel %vm313_vm2, %v310_v1, %v312_v13 }
  0xe5   : > { %v316_v15 = vadd.f32 %v314_v14, %v301_v9 }
  0xe7   : > { %v329_v21 = vadd.f32 %v327_v19, %v316_v15 }
  0xe9   : > { %v342_v24 = vadd.f32 %v340_v20, %v329_v21 }
  0xea   : > { %v387_v26 = vpop.permute.xlu1 %386 }
  0xeb   : > { %v385_v27 = vpop.permute.xlu0 %384  ;;  %v368_v28 = vadd.f32 %v366_v25, %v342_v24 }
  0xec   : > { %v388_v29 = vsel %vm326_vm3, %v385_v27, %v387_v26 }
  0xed   : > { %v390_v32 = vadd.f32 %v388_v29, %v368_v28 }
  0xef   : > { %v403_v37 = vadd.f32 %v401_v33, %v390_v32 }
  0xf2   : > { %v446_v35 = vpop.permute.xlu1 %445 }
  0xf3   : > { %v426_v36 = vpop.permute.xlu0 %425  ;;  %v449_v39 = vsel %vm326_vm3, %v446_v35, %v448_v34 }
  0xf4   : > { %v427_v38 = vsel %vm313_vm2, %v424_v0, %v426_v36 }
  0xf5   : > { %v429_v40 = vadd.f32 %v427_v38, %v403_v37 }
  0xf7   : > { %v451_v42 = vadd.f32 %v449_v39, %v429_v40 }
  0xf9   : > { %v453_v43 = vadd.f32 %v452_v41, %v451_v42 }
  0xfb   : > { %454 = vst [vmem:[%s277_s12] sm:$0xff] %v453_v43 }
  0xfc   : > { %769 = shalt.err (!%p766_p10)
}
  0xfd   : > { %607 = dma.vmem_to_hbm [thread:$0]  (%p972_p7), %s469_s25, 128, %s471_s28, %s456_s23  }
  0xfe PF: > { %s482_s7 = sand.u32 1, %s828_s20   ;;  %p614_p3 = pnand %p579_p5, %p984_p2 }
  0xff   : > { %s483_s24 = scalar_lea.sflag [#allocation6], %s482_s7 }
 0x100   : > { %p615_p6 = pneg %p614_p3 }
 0x102   : > { %811 = dma.done.wait (%p615_p6), %s483_s24, 128  }
 0x103   : > { %813 = vsyncadd (%p615_p6), %s483_s24, 4294967168  ;;  %s1154_s1 = sld [smem:[#allocation17_spill]]  ;;  %s1158_s17 = smov %s820_s18 }
 0x104   : > { %s1155_s26 = sld [smem:[#allocation19_spill]]  ;;  %s1159_s18 = smov %s824_s19 }
 0x105   : > { %s1156_s27 = sld [smem:[#allocation16_spill]]  ;;  %s1161_s20 = smov %s832_s21 }
 0x106   : > { %s1157_s22 = sld [smem:[#allocation18_spill]] }
 0x109   : > { %p22_p7 = scmp.ge.s32.totalorder %s1154_s1, 4  }
 0x10a   : > { %s1160_s19 = smov %s1155_s26 }
 0x10b   : > { %s1162_s21 = smov %s1156_s27  ;;  %24 = sbr.rel (!%p22_p7) target bundleno = 13 (0xd), region = 99 }
 0x110   :  { %489 = vsyncpa [#allocation5], 1 }
 0x111   :  { %491 = vsyncpa [#allocation5 + $0x1], 1 }
 0x112   :  { %492 = vsyncpa [#allocation10], 1 }
 0x113   :  { %494 = vsyncpa [#allocation10 + $0x1], 1 }
 0x114   :  { %495 = vsyncpa [#allocation6], 1 }
 0x115   :  { %497 = vsyncpa [#allocation6 + $0x1], 1 }
 0x116   :  { %498 = vsyncpa [#allocation7], 1 }
 0x117   :  { %500 = vsyncpa [#allocation7 + $0x1], 1 }

</bundles_post_ra>
